<compile_context>
chip_gen: v6e
topology: v6e:2x2x1
jax: 0.10.0
libtpu: 0.0.40
codegen_flags: <defaults>
</compile_context>

<pallas_src>
import functools

import jax
import jax.numpy as jnp
from jax import lax
from jax.experimental import pallas as pl
from jax.experimental.pallas import tpu as pltpu


def _round_up(x, m):
    return (x + m - 1) // m * m


def _encoder_kernel(w_ref, xcol_ref, o_ref):
    """One (batch, frame-tile) grid step.

    w_ref:    (N, L)   resident filter bank (PyTorch conv1d_U weight, squeezed)
    xcol_ref: (L, TF)  transposed-im2col operand, frames on the lane axis
    o_ref:    (N, TF)  output tile already in [B, N, F] orientation
    """
    acc = jnp.dot(w_ref[...], xcol_ref[...], preferred_element_type=jnp.float32)
    o_ref[...] = jnp.maximum(acc, 0.0).astype(o_ref.dtype)   # fused ReLU


def _choose_frame_tile(B, F, N, L, target, vmem_budget_bytes):
    """Largest frame tile (multiple of 128) fitting the double-buffer budget."""
    # Double-buffered per-step VMEM (f32): input (L, TF) + output (N, TF).
    per_frame_bytes = 2 * 4 * (N + L)
    tf_cap = max(128, (vmem_budget_bytes // per_frame_bytes) // 128 * 128)
    tf = min(max(128, (target // 128) * 128), tf_cap, _round_up(F, 128))
    # Keep at least 2 grid steps when possible so megacore (v7x) can shard.
    if B * (-(-F // tf)) < 2 and F > 128:
        tf = max(128, _round_up(-(-F // 2), 128))
    return tf


@functools.partial(jax.jit,
                   static_argnames=("L", "frame_tile", "vmem_budget_bytes"))
def encoder_forward(x, conv_weight, L, *, frame_tile=2048,
                    vmem_budget_bytes=12 * 1024 * 1024):
    """
    Args:
      x:           [B, T] float32 mixture signal
      conv_weight: [N, 1, L] float32 (PyTorch Conv1d weight layout)
      L:           kernel size (stride is L // 2)
    Returns:
      w: [B, N, F] float32, F = (T - L) // (L // 2) + 1
    """
    B, T = x.shape
    N = conv_weight.shape[0]
    assert conv_weight.shape == (N, 1, L), conv_weight.shape
    hop = L // 2
    assert hop >= 1, "kernel size must be >= 2"
    F = (T - L) // hop + 1
    assert F >= 1, "signal shorter than one frame"

    x = x.astype(jnp.float32)
    TF = _choose_frame_tile(B, F, N, L, frame_tile, vmem_budget_bytes)
    n_ft = -(-F // TF)                 # ceil-div
    F_pad = n_ft * TF                  # frames covered by full input blocks

    # Zero-pad so every padded frame has L samples; padded frames only feed
    # output columns >= F, which the partial last output block drops.
    need = (F_pad - 1) * hop + L
    pad = max(0, need - T)
    x_pad = jnp.pad(x, ((0, 0), (0, pad))) if pad else x

    # Transposed im2col view: xcol[b, k, f] = x_pad[b, f*hop + k], (B, L, F_pad).
    # L strided slices + stack (~2x the signal), frames land on the lane axis.
    xcol = jnp.stack(
        [x_pad[:, k: k + (F_pad - 1) * hop + 1: hop] for k in range(L)],
        axis=1)

    # Conv1d weight [N, 1, L] -> single (N, L) tap matrix (stays VMEM-resident).
    w_nl = conv_weight[:, 0, :].astype(jnp.float32)

    cost = pl.CostEstimate(
        flops=2 * B * N * F * L,
        transcendentals=0,
        bytes_accessed=4 * (B * L * F_pad + N * L + B * N * F))

    out = pl.pallas_call(
        _encoder_kernel,
        out_shape=jax.ShapeDtypeStruct((B, N, F), jnp.float32),
        grid_spec=pltpu.PrefetchScalarGridSpec(
            num_scalar_prefetch=0,
            grid=(B, n_ft),
            in_specs=[
                pl.BlockSpec((N, L), lambda b, f: (0, 0)),            # resident
                pl.BlockSpec((None, L, TF), lambda b, f: (b, 0, f)),  # lane-dense
            ],
            out_specs=pl.BlockSpec((None, N, TF), lambda b, f: (b, 0, f)),
        ),
        compiler_params=pltpu.CompilerParams(
            dimension_semantics=("parallel", "parallel"),
            vmem_limit_bytes=32 * 1024 * 1024),
        cost_estimate=cost,
    )(w_nl, xcol)
    return out


def reference_forward(x, conv_weight, L):
    """Pure-JAX reference using lax.conv (mimics torch Conv1d, no bias) + ReLU."""
    hop = L // 2
    xb = x[:, None, :]                               # [B, 1, T]  (NCW)
    out = lax.conv_general_dilated(
        xb, conv_weight,                             # weight [N, 1, L] = (OIW)
        window_strides=(hop,),
        padding="VALID",
        dimension_numbers=("NCH", "OIH", "NCH"),
    )
    return jnp.maximum(out, 0.0)


if __name__ == "__main__":
    key = jax.random.PRNGKey(0)

    def run_case(B, T, L, N, k, **kw):
        kx, kw_ = jax.random.split(k)
        x = jax.random.normal(kx, (B, T), dtype=jnp.float32)
        conv_weight = jax.random.normal(kw_, (N, 1, L), dtype=jnp.float32) * 0.1
        out = jax.block_until_ready(encoder_forward(x, conv_weight, L, **kw))
        ref = jax.block_until_ready(reference_forward(x, conv_weight, L))
        F = (T - L) // (L // 2) + 1
        assert out.shape == ref.shape == (B, N, F), (out.shape, ref.shape)
        max_err = float(jnp.max(jnp.abs(out - ref)))
        assert jnp.allclose(out, ref, atol=2e-4, rtol=2e-4), max_err

    k1, k2, k3 = jax.random.split(key, 3)
    # Small config consistent with the module's forward: B=2, T=256, L=16, N=32.
    run_case(2, 256, 16, 32, k1)
    # Larger signal: single big frame tile (F=1023 -> TF=1024, partial store).
    run_case(2, 8192, 16, 32, k2)
    # Same signal with a small explicit frame tile to exercise the multi-tile
    # (grid n_ft > 1) path and the partial last output block.
    run_case(2, 8192, 16, 32, k3, frame_tile=256)

    print("KERNEL_OK")
</pallas_src>

<mosaic_0001>
module attributes {stable_mosaic.version = 11 : i64} {
  func.func @_encoder_kernel(%arg0: i32, %arg1: i32, %arg2: memref<32x16xf32, #tpu.memory_space<vmem>>, %arg3: memref<1x16x128xf32, #tpu.memory_space<vmem>>, %arg4: memref<1x32x128xf32, #tpu.memory_space<vmem>>) attributes {dimension_semantics = [#tpu.dimension_semantics<parallel>, #tpu.dimension_semantics<parallel>], iteration_bounds = array<i64: 2, 1>, scalar_prefetch = 0 : i64, scratch_operands = 0 : i64, tpu.core_type = #tpu.core_type<tc>, window_params = [{pipeline_mode = #tpu.pipeline_mode<synchronous>, transform_indices = @transform_0, window_bounds = array<i64: 32, 16>}, {transform_indices = @transform_1, window_bounds = array<i64: 1, 16, 128>}, {transform_indices = @transform_2, window_bounds = array<i64: 1, 32, 128>}]} {
    %c0 = arith.constant 0 : index
    %c0_0 = arith.constant 0 : index
    %0 = vector.load %arg2[%c0, %c0_0] : memref<32x16xf32, #tpu.memory_space<vmem>>, vector<32x16xf32>
    %c0_1 = arith.constant 0 : index
    %c0_2 = arith.constant 0 : index
    %c0_3 = arith.constant 0 : index
    %1 = vector.load %arg3[%c0_1, %c0_2, %c0_3] : memref<1x16x128xf32, #tpu.memory_space<vmem>>, vector<1x16x128xf32>
    %2 = vector.shape_cast %1 : vector<1x16x128xf32> to vector<16x128xf32>
    %cst = arith.constant dense<0.000000e+00> : vector<32x128xf32>
    %3 = tpu.matmul %0, %2, %cst {dimension_numbers = #tpu.dot_dimension_numbers<[1], [0], [0], [1], [0, 0, 1, 1], [], []>} : vector<32x16xf32>, vector<16x128xf32>, vector<32x128xf32> -> vector<32x128xf32>
    %cst_4 = arith.constant 0.000000e+00 : f32
    %4 = vector.broadcast %cst_4 : f32 to vector<32x128xf32>
    %5 = arith.maximumf %3, %4 : vector<32x128xf32>
    %c0_5 = arith.constant 0 : index
    %c0_6 = arith.constant 0 : index
    %c0_7 = arith.constant 0 : index
    %6 = vector.load %arg4[%c0_5, %c0_6, %c0_7] : memref<1x32x128xf32, #tpu.memory_space<vmem>>, vector<1x32x128xf32>
    %7 = vector.shape_cast %6 : vector<1x32x128xf32> to vector<32x128xf32>
    %8 = vector.shape_cast %5 : vector<32x128xf32> to vector<1x32x128xf32>
    tpu.vector_store %arg4[%c0_5, %c0_6, %c0_7], %8 {strides = array<i32>} : memref<1x32x128xf32, #tpu.memory_space<vmem>>, vector<1x32x128xf32>,
    return
  }
  func.func @transform_0(%arg0: i32, %arg1: i32) -> (i32, i32) {
    %c0_i32 = arith.constant 0 : i32
    %c0_i32_0 = arith.constant 0 : i32
    %c0_i32_1 = arith.constant 0 : i32
    return %c0_i32, %c0_i32_0 : i32, i32
  }
  func.func @transform_1(%arg0: i32, %arg1: i32) -> (i32, i32, i32) {
    %c0_i32 = arith.constant 0 : i32
    %c0_i32_0 = arith.constant 0 : i32
    return %arg0, %c0_i32, %arg1 : i32, i32, i32
  }
  func.func @transform_2(%arg0: i32, %arg1: i32) -> (i32, i32, i32) {
    %c0_i32 = arith.constant 0 : i32
    %c0_i32_0 = arith.constant 0 : i32
    return %arg0, %c0_i32, %arg1 : i32, i32, i32
  }
}

</mosaic_0001>

<bundles_post_ra>
// kernel: encoder_forward.1
= control target key start
LH: loop header
LB: loop body
LE: loop exit
PB: predicated region body
PF: predicated region fallthrough
CT: control target
= control target key end

     0   :  { %s470_s9 = smov 0   ;;  %s472_s10 = smov 0   ;;  %s519_s0 = inlined_call_operand.vmem [shape: f32[32,16], index: 0, kind: input, shape index: {}]   ;;  %s520_s1 = inlined_call_operand.vmem [shape: f32[2,16,128], index: 1, kind: input, shape index: {}]   ;;  %s521_s2 = inlined_call_operand.vmem [shape: f32[2,32,31], index: 2, kind: output, shape index: {}]  }
   0x1   :  { %s474_s11 = smov 0  }
   0x2 LB: > { %s24_s12 = sadd.s32 1, %s449_s10  ;;  %p374_p0 = scmp.ge.s32.totalorder %s453_s11, 1  ;;  %s453_s11 = sphi %s474_s11, %s12_s11   ;;  %s449_s10 = sphi %s472_s10, %s523_s10   ;;  %s445_s9 = sphi %s470_s9, %s522_s9  }
   0x3   : > { %p26_p1 = scmp.ge.s32.totalorder %s24_s12, 2  ;;  %p131_p2 = scmp.lt.s32.totalorder %s453_s11, 3 }
   0x5   : > { %s525_s12 = smov (%p26_p1, %s24_s12), 0  ;;  %p132_p3 = pnand %p374_p0, %p131_p2 }
   0x6   : > { %p159_p4 = scmp.lt.s32.totalorder (!%p132_p3), %s445_s9, 1 }
   0x7   : > { %135 = sbr.rel (%p132_p3) target bundleno = 218 (0xda), region = 28 }
   0xc   : > { %v175_v0 = vld [vmem:[%s519_s0] sm:$0xff]  ;;  %vm181_vm0 = vcmask 130048   ;;  %v177_v1 = vld [vmem:[%s519_s0 + $0x10] sm:$0xff]  ;;  %s527_s9 = smov (!%p159_p4, %s445_s9), 1  ;;  %v176_v4 = vld [vmem:[%s519_s0 + $0x8] sm:$0xff] }
   0xd   : > { %397 = vmatprep.mubr.msk.f32.mxu0 %vm181_vm0, %v175_v0  ;;  %400 = vmatprep.mubr.msk.f32.mxu1 %vm181_vm0, %v177_v1  ;;  %s385_s17 = sshll.u32 %s527_s9, 4  ;;  %v178_v5 = vld [vmem:[%s519_s0 + $0x18] sm:$0xff]  ;;  %s386_s25 = sshll.u32 %s527_s9, 5 }
   0xe   : > { %s166_s20 = scalar_lea.vmem %s520_s1, %s385_s17  ;;  %s174_s28 = scalar_lea.vmem %s521_s2, %s386_s25 }
   0xf   : > { %v180_v2 = vld [vmem:[%s166_s20 + $0x8] sm:$0xff]  ;;  %v179_v3 = vld [vmem:[%s166_s20] sm:$0xff] }
  0x10   : > { %393 = vmatprep.subr.mxu0 %v180_v2  ;;  %403 = vmatprep.subr.mxu1 %v180_v2 }
  0x11   : > { %394 = vmatpush3.msra.mxu0 %v180_v2  ;;  %405 = vmatpush3.msra.mxu1 %v180_v2 }
  0x12   : > { %395 = vmatprep.subr.mxu0 %v179_v3  ;;  %404 = vmatprep.subr.mxu1 %v179_v3 }
  0x13   : > { %396 = vmatpush3.msra.mxu0 %v179_v3  ;;  %406 = vmatpush3.msra.mxu1 %v179_v3 }
  0x14   : > { %398 = vmatmul.mubr.msk.f32.vlgmr.msra.gmra.mxu0 %vm181_vm0, %v176_v4  ;;  %401 = vmatmul.mubr.msk.f32.vlgmr.msra.gmra.mxu1 %vm181_vm0, %v178_v5 }
  0xd4   : > { %v399_v6 = vpop.f32.mrf.mxu0  ;;  %v402_v7 = vpop.f32.mrf.mxu1 }
  0xd5   : > { %v280_v8 = vmax.f32 %v399_v6, 0.0  ;;  %v282_v9 = vmax.f32 %v402_v7, 0.0 }
  0xd6   : > { %v260_v10 = vpop.f32.mrf.mxu0  ;;  %v270_v11 = vpop.f32.mrf.mxu1 }
  0xd7   : > { %284 = vst [vmem:[%s174_s28 + $0x8] sm:$0xff] %v280_v8  ;;  %286 = vst [vmem:[%s174_s28 + $0x18] sm:$0xff] %v282_v9  ;;  %v279_v12 = vmax.f32 %v260_v10, 0.0  ;;  %v281_v13 = vmax.f32 %v270_v11, 0.0 }
  0xd9   : > { %283 = vst [vmem:[%s174_s28] sm:$0xff] %v279_v12  ;;  %285 = vst [vmem:[%s174_s28 + $0x10] sm:$0xff] %v281_v13 }
  0xda PF: > { %s12_s11 = sadd.s32 1, %s453_s11   ;;  %s522_s9 = smov %s449_s10 }
  0xdb   : > { %p9_p5 = scmp.ge.s32.totalorder %s12_s11, 4   ;;  %s523_s10 = smov %s525_s12 }
  0xdd   :  { %11 = sbr.rel (!%p9_p5) target bundleno = 2 (0x2), region = 58 }

</bundles_post_ra>
